<compile_context>
chip_gen: v7x
topology: tpu7x:2x2x1
jax: 0.10.0
libtpu: 0.0.40
codegen_flags: <defaults>
</compile_context>

<pallas_src>
import functools

import jax
import jax.numpy as jnp
from jax import lax
from jax.experimental import pallas as pl
from jax.experimental.pallas import tpu as pltpu


def _nsm_loss_kernel(a_ref, b_ref, out_ref,
                     acc_ref, l_row_ref, l_col_ref,
                     *, inv_temp, eps, n_rows, mxu_dtype):
    i = pl.program_id(0)            # row-block index    (outer)
    j = pl.program_id(1)            # column-block index (inner, fastest)
    ni = pl.num_programs(0)
    nj = pl.num_programs(1)

    # ---- init persistent accumulators on the very first grid step ----------
    @pl.when((i == 0) & (j == 0))
    def _init():
        acc_ref[...] = jnp.zeros_like(acc_ref)
        l_col_ref[...] = jnp.zeros_like(l_col_ref)

    # ---- reset per-row-block exp-sum at the start of each row sweep --------
    @pl.when(j == 0)
    def _reset_row():
        l_row_ref[...] = jnp.zeros_like(l_row_ref)

    a = a_ref[...].astype(jnp.float32)             # (TM, D)
    b = b_ref[...].astype(jnp.float32)             # (TN, D)

    # eps-stabilised L2 normalisation: rsqrt(max(ss, eps^2)) == 1/max(||x||, eps)
    a_inv = lax.rsqrt(jnp.maximum(jnp.sum(a * a, axis=1, keepdims=True),
                                  eps * eps))
    b_inv = lax.rsqrt(jnp.maximum(jnp.sum(b * b, axis=1, keepdims=True),
                                  eps * eps))
    a_scaled = a * (a_inv * inv_temp)              # fold 1/temperature into a
    b_norm = b * b_inv

    # x[k, l] = <a_norm[k], b_norm[l]> / temperature ; bf16 MXU ops, f32 acc,
    # contraction on dim 1 of both operands (no transpose materialised).
    x = lax.dot_general(
        a_scaled.astype(mxu_dtype), b_norm.astype(mxu_dtype),
        dimension_numbers=(((1,), (1,)), ((), ())),
        preferred_element_type=jnp.float32)        # (TM, TN)

    # Single exp per tile, referenced to the known logit bound 1/temperature.
    e = jnp.exp(x - inv_temp)

    l_row_ref[...] = l_row_ref[...] + jnp.sum(e, axis=1, keepdims=True)  # (TM,1)
    l_col_ref[j] = l_col_ref[j] + jnp.sum(e, axis=0, keepdims=True)      # (1,TN)

    # ---- trace: diagonal tiles only; diag(x)[k] = <a_scaled[k], b_norm[k]> -
    @pl.when(i == j)
    def _trace():
        acc_ref[...] += 2.0 * jnp.sum(a_scaled * b_norm)

    # ---- finalize row LSEs of this row block at the last column block ------
    @pl.when(j == nj - 1)
    def _row_lse():
        acc_ref[...] -= jnp.sum(inv_temp + jnp.log(l_row_ref[...]))

    # ---- finalize column LSEs of this column block at the last row block ---
    @pl.when(i == ni - 1)
    def _col_lse():
        acc_ref[...] -= jnp.sum(inv_temp + jnp.log(l_col_ref[j]))

    # ---- single (1,1) output write, only on the final grid step ------------
    @pl.when((i == ni - 1) & (j == nj - 1))
    def _out():
        out_ref[...] = -acc_ref[...] / n_rows


def _pick_tile(n, max_tile=256):
    """Largest divisor of n <= max_tile, preferring lane/sublane alignment
    (multiples of 128, then 8); falls back to a single full block."""
    if n <= max_tile:
        return n
    for align in (128, 8):
        for t in range(max_tile - max_tile % align, 0, -align):
            if n % t == 0:
                return t
    return n


def norm_softmax_loss(a, b, temperature=0.05, eps=1e-8,
                      mxu_dtype=jnp.bfloat16, max_tile=256):
    """Bidirectional NCE loss; a, b: (N, D) embeddings (square sim matrix)."""
    N, D = a.shape
    M, D2 = b.shape
    assert D == D2, "a and b must share the embedding dimension"
    assert N == M, "bidirectional loss needs a square similarity matrix"
    # LSE is referenced to the known bound 1/temperature instead of an online
    # max; exp(x - 1/T) stays in normal f32 range as long as the span 2/T < ~87.
    assert 2.0 / temperature < 80.0, "temperature too small for bound-referenced LSE"

    tm = _pick_tile(N, max_tile)
    tn = tm                          # square tiles -> diagonal lives in i == j
    ni = N // tm
    nj = N // tn

    kernel = functools.partial(
        _nsm_loss_kernel,
        inv_temp=float(1.0 / temperature),
        eps=float(eps),
        n_rows=float(N),
        mxu_dtype=mxu_dtype,
    )

    out = pl.pallas_call(
        kernel,
        out_shape=jax.ShapeDtypeStruct((1, 1), jnp.float32),
        grid_spec=pltpu.PrefetchScalarGridSpec(
            num_scalar_prefetch=0,
            grid=(ni, nj),
            in_specs=[
                pl.BlockSpec((tm, D), lambda i, j: (i, 0)),   # a row block
                pl.BlockSpec((tn, D), lambda i, j: (j, 0)),   # b column block
            ],
            out_specs=pl.BlockSpec((1, 1), lambda i, j: (0, 0)),
            scratch_shapes=[
                pltpu.VMEM((1, 1), jnp.float32),        # acc = 2*trace - sum(LSEs)
                pltpu.VMEM((tm, 1), jnp.float32),       # row exp-sums (per row blk)
                pltpu.VMEM((nj, 1, tn), jnp.float32),   # col exp-sums (persistent)
            ],
        ),
        compiler_params=pltpu.CompilerParams(
            # Both grid axes carry cross-step state (column accumulator across
            # i, scalar acc across everything) -> keep them sequential.
            # TODO(synk): per-core partial accumulators would allow a
            # "parallel" row axis on v7x's 2 TensorCores.
            dimension_semantics=("arbitrary", "arbitrary"),
            vmem_limit_bytes=32 * 1024 * 1024,
        ),
    )(a, b)
    return out[0, 0]


def _reference_loss(a, b, temperature=0.05, eps=1e-8):
    a = a.astype(jnp.float32)
    b = b.astype(jnp.float32)
    a_n = jnp.linalg.norm(a, axis=1, keepdims=True)
    b_n = jnp.linalg.norm(b, axis=1, keepdims=True)
    a_norm = a / jnp.maximum(a_n, eps)
    b_norm = b / jnp.maximum(b_n, eps)
    x = (a_norm @ b_norm.T) / temperature
    i_logsm = jax.nn.log_softmax(x, axis=1)
    j_logsm = jax.nn.log_softmax(x.T, axis=1)
    return -jnp.mean(jnp.diag(i_logsm)) - jnp.mean(jnp.diag(j_logsm))


if __name__ == "__main__":
    key = jax.random.PRNGKey(0)

    # ---- case 1: small single-tile problem (N=8, D=32) ---------------------
    ka, kb = jax.random.split(key)
    a1 = jax.random.normal(ka, (8, 32), dtype=jnp.float32)
    b1 = jax.random.normal(kb, (8, 32), dtype=jnp.float32)
    ref1 = jax.block_until_ready(_reference_loss(a1, b1))
    # f32 MXU path: tight check against the f32 reference.
    l1_f32 = jax.block_until_ready(
        norm_softmax_loss(a1, b1, mxu_dtype=jnp.float32))
    assert jnp.allclose(l1_f32, ref1, atol=1e-4, rtol=1e-4), (l1_f32, ref1)
    # default bf16 MXU path: looser tolerance (bf16 operand rounding).
    l1_bf16 = jax.block_until_ready(norm_softmax_loss(a1, b1))
    assert jnp.allclose(l1_bf16, ref1, atol=3e-2, rtol=3e-2), (l1_bf16, ref1)

    # ---- case 2: exercise the tiled grid (N=16, D=128, 8x8 tiles -> 2x2) ---
    kc, kd = jax.random.split(ka)
    a2 = jax.random.normal(kc, (16, 128), dtype=jnp.float32)
    b2 = jax.random.normal(kd, (16, 128), dtype=jnp.float32)
    ref2 = jax.block_until_ready(_reference_loss(a2, b2))
    l2_f32 = jax.block_until_ready(
        norm_softmax_loss(a2, b2, mxu_dtype=jnp.float32, max_tile=8))
    assert jnp.allclose(l2_f32, ref2, atol=1e-4, rtol=1e-4), (l2_f32, ref2)
    l2_bf16 = jax.block_until_ready(norm_softmax_loss(a2, b2, max_tile=8))
    assert jnp.allclose(l2_bf16, ref2, atol=3e-2, rtol=3e-2), (l2_bf16, ref2)

    print("KERNEL_OK")
</pallas_src>

<mosaic_0001>
module attributes {stable_mosaic.version = 11 : i64} {
  func.func @_nsm_loss_kernel(%arg0: i32, %arg1: i32, %arg2: memref<8x32xf32, #tpu.memory_space<vmem>>, %arg3: memref<8x32xf32, #tpu.memory_space<vmem>>, %arg4: memref<1x1xf32, #tpu.memory_space<vmem>>, %arg5: memref<1x1xf32, #tpu.memory_space<vmem>>, %arg6: memref<8x1xf32, #tpu.memory_space<vmem>>, %arg7: memref<1x1x8xf32, #tpu.memory_space<vmem>>) attributes {dimension_semantics = [#tpu.dimension_semantics<arbitrary>, #tpu.dimension_semantics<arbitrary>], iteration_bounds = array<i64: 1, 1>, scalar_prefetch = 0 : i64, scratch_operands = 3 : i64, tpu.core_type = #tpu.core_type<tc>, window_params = [{transform_indices = @transform_0, window_bounds = array<i64: 8, 32>}, {transform_indices = @transform_1, window_bounds = array<i64: 8, 32>}, {pipeline_mode = #tpu.pipeline_mode<synchronous>, transform_indices = @transform_2, window_bounds = array<i64: 1, 1>}]} {
    %c0_i32 = arith.constant 0 : i32
    %0 = arith.cmpi eq, %arg0, %c0_i32 : i32
    %c0_i32_0 = arith.constant 0 : i32
    %1 = arith.cmpi eq, %arg1, %c0_i32_0 : i32
    %2 = arith.andi %0, %1 : i1
    %3 = arith.extui %2 : i1 to i32
    %c0_i32_1 = arith.constant 0 : i32
    %4 = arith.cmpi ne, %3, %c0_i32_1 : i32
    scf.if %4 {
      %cst_31 = arith.constant 0.000000e+00 : f32
      %61 = vector.broadcast %cst_31 : f32 to vector<1x1xf32>
      %c0_32 = arith.constant 0 : index
      %c0_33 = arith.constant 0 : index
      %62 = vector.load %arg5[%c0_32, %c0_33] : memref<1x1xf32, #tpu.memory_space<vmem>>, vector<1x1xf32>
      tpu.vector_store %arg5[%c0_32, %c0_33], %61 {strides = array<i32>} : memref<1x1xf32, #tpu.memory_space<vmem>>, vector<1x1xf32>,
      %cst_34 = arith.constant 0.000000e+00 : f32
      %63 = vector.broadcast %cst_34 : f32 to vector<1x1x8xf32>
      %c0_35 = arith.constant 0 : index
      %c0_36 = arith.constant 0 : index
      %c0_37 = arith.constant 0 : index
      %64 = vector.load %arg7[%c0_35, %c0_36, %c0_37] : memref<1x1x8xf32, #tpu.memory_space<vmem>>, vector<1x1x8xf32>
      tpu.vector_store %arg7[%c0_35, %c0_36, %c0_37], %63 {strides = array<i32>} : memref<1x1x8xf32, #tpu.memory_space<vmem>>, vector<1x1x8xf32>,
    } else {
    }
    %c0_i32_2 = arith.constant 0 : i32
    %5 = arith.cmpi eq, %arg1, %c0_i32_2 : i32
    %6 = arith.extui %5 : i1 to i32
    %c0_i32_3 = arith.constant 0 : i32
    %7 = arith.cmpi ne, %6, %c0_i32_3 : i32
    scf.if %7 {
      %cst_31 = arith.constant 0.000000e+00 : f32
      %61 = vector.broadcast %cst_31 : f32 to vector<8x1xf32>
      %c0_32 = arith.constant 0 : index
      %c0_33 = arith.constant 0 : index
      %62 = vector.load %arg6[%c0_32, %c0_33] : memref<8x1xf32, #tpu.memory_space<vmem>>, vector<8x1xf32>
      tpu.vector_store %arg6[%c0_32, %c0_33], %61 {strides = array<i32>} : memref<8x1xf32, #tpu.memory_space<vmem>>, vector<8x1xf32>,
    } else {
    }
    %c0 = arith.constant 0 : index
    %c0_4 = arith.constant 0 : index
    %8 = vector.load %arg2[%c0, %c0_4] : memref<8x32xf32, #tpu.memory_space<vmem>>, vector<8x32xf32>
    %c0_5 = arith.constant 0 : index
    %c0_6 = arith.constant 0 : index
    %9 = vector.load %arg3[%c0_5, %c0_6] : memref<8x32xf32, #tpu.memory_space<vmem>>, vector<8x32xf32>
    %10 = arith.mulf %8, %8 : vector<8x32xf32>
    %cst = arith.constant dense<0.000000e+00> : vector<8xf32>
    %11 = vector.multi_reduction <add>, %10, %cst [1] : vector<8x32xf32> to vector<8xf32>
    %12 = vector.shape_cast %11 : vector<8xf32> to vector<8x1xf32>
    %cst_7 = arith.constant 1.000000e-16 : f32
    %13 = vector.broadcast %cst_7 : f32 to vector<8x1xf32>
    %14 = arith.maximumf %12, %13 : vector<8x1xf32>
    %15 = math.rsqrt %14 : vector<8x1xf32>
    %16 = arith.mulf %9, %9 : vector<8x32xf32>
    %cst_8 = arith.constant dense<0.000000e+00> : vector<8xf32>
    %17 = vector.multi_reduction <add>, %16, %cst_8 [1] : vector<8x32xf32> to vector<8xf32>
    %18 = vector.shape_cast %17 : vector<8xf32> to vector<8x1xf32>
    %cst_9 = arith.constant 1.000000e-16 : f32
    %19 = vector.broadcast %cst_9 : f32 to vector<8x1xf32>
    %20 = arith.maximumf %18, %19 : vector<8x1xf32>
    %21 = math.rsqrt %20 : vector<8x1xf32>
    %cst_10 = arith.constant 2.000000e+01 : f32
    %22 = vector.broadcast %cst_10 : f32 to vector<8x1xf32>
    %23 = arith.mulf %15, %22 : vector<8x1xf32>
    %24 = vector.broadcast %23 : vector<8x1xf32> to vector<8x32xf32>
    %25 = arith.mulf %8, %24 : vector<8x32xf32>
    %26 = vector.broadcast %21 : vector<8x1xf32> to vector<8x32xf32>
    %27 = arith.mulf %9, %26 : vector<8x32xf32>
    %cst_11 = arith.constant dense<0.000000e+00> : vector<8x8xf32>
    %28 = tpu.matmul %25, %27, %cst_11 {dimension_numbers = #tpu.dot_dimension_numbers<[1], [1], [0], [0], [0, 0, 1, 0], [], []>} : vector<8x32xf32>, vector<8x32xf32>, vector<8x8xf32> -> vector<8x8xf32>
    %cst_12 = arith.constant 2.000000e+01 : f32
    %29 = vector.broadcast %cst_12 : f32 to vector<8x8xf32>
    %30 = arith.subf %28, %29 : vector<8x8xf32>
    %31 = math.exp %30 : vector<8x8xf32>
    %c0_13 = arith.constant 0 : index
    %c0_14 = arith.constant 0 : index
    %32 = vector.load %arg6[%c0_13, %c0_14] : memref<8x1xf32, #tpu.memory_space<vmem>>, vector<8x1xf32>
    %cst_15 = arith.constant dense<0.000000e+00> : vector<8xf32>
    %33 = vector.multi_reduction <add>, %31, %cst_15 [1] : vector<8x8xf32> to vector<8xf32>
    %34 = vector.shape_cast %33 : vector<8xf32> to vector<8x1xf32>
    %35 = arith.addf %32, %34 : vector<8x1xf32>
    %c0_16 = arith.constant 0 : index
    %c0_17 = arith.constant 0 : index
    %36 = vector.load %arg6[%c0_16, %c0_17] : memref<8x1xf32, #tpu.memory_space<vmem>>, vector<8x1xf32>
    tpu.vector_store %arg6[%c0_16, %c0_17], %35 {strides = array<i32>} : memref<8x1xf32, #tpu.memory_space<vmem>>, vector<8x1xf32>,
    %37 = arith.index_cast %arg1 : i32 to index
    %c0_18 = arith.constant 0 : index
    %c0_19 = arith.constant 0 : index
    %38 = vector.load %arg7[%37, %c0_18, %c0_19] : memref<1x1x8xf32, #tpu.memory_space<vmem>>, vector<1x1x8xf32>
    %39 = vector.shape_cast %38 : vector<1x1x8xf32> to vector<1x8xf32>
    %cst_20 = arith.constant dense<0.000000e+00> : vector<8xf32>
    %40 = vector.multi_reduction <add>, %31, %cst_20 [0] : vector<8x8xf32> to vector<8xf32>
    %41 = vector.shape_cast %40 : vector<8xf32> to vector<1x8xf32>
    %42 = arith.addf %39, %41 : vector<1x8xf32>
    %43 = arith.index_cast %arg1 : i32 to index
    %c0_21 = arith.constant 0 : index
    %c0_22 = arith.constant 0 : index
    %44 = vector.load %arg7[%43, %c0_21, %c0_22] : memref<1x1x8xf32, #tpu.memory_space<vmem>>, vector<1x1x8xf32>
    %45 = vector.shape_cast %44 : vector<1x1x8xf32> to vector<1x8xf32>
    %46 = vector.shape_cast %42 : vector<1x8xf32> to vector<1x1x8xf32>
    tpu.vector_store %arg7[%43, %c0_21, %c0_22], %46 {strides = array<i32>} : memref<1x1x8xf32, #tpu.memory_space<vmem>>, vector<1x1x8xf32>,
    %47 = arith.cmpi eq, %arg0, %arg1 : i32
    %48 = arith.extui %47 : i1 to i32
    %c0_i32_23 = arith.constant 0 : i32
    %49 = arith.cmpi ne, %48, %c0_i32_23 : i32
    scf.if %49 {
      %c0_31 = arith.constant 0 : index
      %c0_32 = arith.constant 0 : index
      %61 = vector.load %arg5[%c0_31, %c0_32] : memref<1x1xf32, #tpu.memory_space<vmem>>, vector<1x1xf32>
      %62 = arith.mulf %25, %27 : vector<8x32xf32>
      %63 = vector.shape_cast %62 : vector<8x32xf32> to vector<1x8x32xf32>
      %cst_33 = arith.constant dense<0.000000e+00> : vector<1xf32>
      %64 = vector.multi_reduction <add>, %63, %cst_33 [1, 2] : vector<1x8x32xf32> to vector<1xf32>
      %65 = vector.shape_cast %64 : vector<1xf32> to vector<1x1x1xf32>
      %66 = vector.extract %65[0, 0, 0] : f32 from vector<1x1x1xf32>
      %cst_34 = arith.constant 2.000000e+00 : f32
      %67 = arith.mulf %cst_34, %66 : f32
      %68 = vector.broadcast %67 : f32 to vector<1x1xf32>
      %69 = arith.addf %61, %68 : vector<1x1xf32>
      %c0_35 = arith.constant 0 : index
      %c0_36 = arith.constant 0 : index
      %70 = vector.load %arg5[%c0_35, %c0_36] : memref<1x1xf32, #tpu.memory_space<vmem>>, vector<1x1xf32>
      tpu.vector_store %arg5[%c0_35, %c0_36], %69 {strides = array<i32>} : memref<1x1xf32, #tpu.memory_space<vmem>>, vector<1x1xf32>,
    } else {
    }
    %c0_i32_24 = arith.constant 0 : i32
    %50 = arith.cmpi eq, %arg1, %c0_i32_24 : i32
    %51 = arith.extui %50 : i1 to i32
    %c0_i32_25 = arith.constant 0 : i32
    %52 = arith.cmpi ne, %51, %c0_i32_25 : i32
    scf.if %52 {
      %c0_31 = arith.constant 0 : index
      %c0_32 = arith.constant 0 : index
      %61 = vector.load %arg5[%c0_31, %c0_32] : memref<1x1xf32, #tpu.memory_space<vmem>>, vector<1x1xf32>
      %c0_33 = arith.constant 0 : index
      %c0_34 = arith.constant 0 : index
      %62 = vector.load %arg6[%c0_33, %c0_34] : memref<8x1xf32, #tpu.memory_space<vmem>>, vector<8x1xf32>
      %63 = math.log %62 : vector<8x1xf32>
      %cst_35 = arith.constant 2.000000e+01 : f32
      %64 = vector.broadcast %cst_35 : f32 to vector<8x1xf32>
      %65 = arith.addf %64, %63 : vector<8x1xf32>
      %66 = vector.shape_cast %65 : vector<8x1xf32> to vector<1x8x1xf32>
      %cst_36 = arith.constant dense<0.000000e+00> : vector<1xf32>
      %67 = vector.multi_reduction <add>, %66, %cst_36 [1, 2] : vector<1x8x1xf32> to vector<1xf32>
      %68 = vector.shape_cast %67 : vector<1xf32> to vector<1x1x1xf32>
      %69 = vector.extract %68[0, 0, 0] : f32 from vector<1x1x1xf32>
      %70 = vector.broadcast %69 : f32 to vector<1x1xf32>
      %71 = arith.subf %61, %70 : vector<1x1xf32>
      %c0_37 = arith.constant 0 : index
      %c0_38 = arith.constant 0 : index
      %72 = vector.load %arg5[%c0_37, %c0_38] : memref<1x1xf32, #tpu.memory_space<vmem>>, vector<1x1xf32>
      tpu.vector_store %arg5[%c0_37, %c0_38], %71 {strides = array<i32>} : memref<1x1xf32, #tpu.memory_space<vmem>>, vector<1x1xf32>,
    } else {
    }
    %c0_i32_26 = arith.constant 0 : i32
    %53 = arith.cmpi eq, %arg0, %c0_i32_26 : i32
    %54 = arith.extui %53 : i1 to i32
    %c0_i32_27 = arith.constant 0 : i32
    %55 = arith.cmpi ne, %54, %c0_i32_27 : i32
    scf.if %55 {
      %c0_31 = arith.constant 0 : index
      %c0_32 = arith.constant 0 : index
      %61 = vector.load %arg5[%c0_31, %c0_32] : memref<1x1xf32, #tpu.memory_space<vmem>>, vector<1x1xf32>
      %62 = arith.index_cast %arg1 : i32 to index
      %c0_33 = arith.constant 0 : index
      %c0_34 = arith.constant 0 : index
      %63 = vector.load %arg7[%62, %c0_33, %c0_34] : memref<1x1x8xf32, #tpu.memory_space<vmem>>, vector<1x1x8xf32>
      %64 = vector.shape_cast %63 : vector<1x1x8xf32> to vector<1x8xf32>
      %65 = math.log %64 : vector<1x8xf32>
      %cst_35 = arith.constant 2.000000e+01 : f32
      %66 = vector.broadcast %cst_35 : f32 to vector<1x8xf32>
      %67 = arith.addf %66, %65 : vector<1x8xf32>
      %68 = vector.shape_cast %67 : vector<1x8xf32> to vector<1x1x8xf32>
      %cst_36 = arith.constant dense<0.000000e+00> : vector<1xf32>
      %69 = vector.multi_reduction <add>, %68, %cst_36 [1, 2] : vector<1x1x8xf32> to vector<1xf32>
      %70 = vector.shape_cast %69 : vector<1xf32> to vector<1x1x1xf32>
      %71 = vector.extract %70[0, 0, 0] : f32 from vector<1x1x1xf32>
      %72 = vector.broadcast %71 : f32 to vector<1x1xf32>
      %73 = arith.subf %61, %72 : vector<1x1xf32>
      %c0_37 = arith.constant 0 : index
      %c0_38 = arith.constant 0 : index
      %74 = vector.load %arg5[%c0_37, %c0_38] : memref<1x1xf32, #tpu.memory_space<vmem>>, vector<1x1xf32>
      tpu.vector_store %arg5[%c0_37, %c0_38], %73 {strides = array<i32>} : memref<1x1xf32, #tpu.memory_space<vmem>>, vector<1x1xf32>,
    } else {
    }
    %c0_i32_28 = arith.constant 0 : i32
    %56 = arith.cmpi eq, %arg0, %c0_i32_28 : i32
    %c0_i32_29 = arith.constant 0 : i32
    %57 = arith.cmpi eq, %arg1, %c0_i32_29 : i32
    %58 = arith.andi %56, %57 : i1
    %59 = arith.extui %58 : i1 to i32
    %c0_i32_30 = arith.constant 0 : i32
    %60 = arith.cmpi ne, %59, %c0_i32_30 : i32
    scf.if %60 {
      %c0_31 = arith.constant 0 : index
      %c0_32 = arith.constant 0 : index
      %61 = vector.load %arg5[%c0_31, %c0_32] : memref<1x1xf32, #tpu.memory_space<vmem>>, vector<1x1xf32>
      %cst_33 = arith.constant 0.000000e+00 : f32
      %62 = vector.broadcast %cst_33 : f32 to vector<1x1xf32>
      %63 = arith.subf %62, %61 : vector<1x1xf32>
      %cst_34 = arith.constant 8.000000e+00 : f32
      %64 = vector.broadcast %cst_34 : f32 to vector<1x1xf32>
      %65 = arith.divf %63, %64 : vector<1x1xf32>
      %c0_35 = arith.constant 0 : index
      %c0_36 = arith.constant 0 : index
      %66 = vector.load %arg4[%c0_35, %c0_36] : memref<1x1xf32, #tpu.memory_space<vmem>>, vector<1x1xf32>
      tpu.vector_store %arg4[%c0_35, %c0_36], %65 {strides = array<i32>} : memref<1x1xf32, #tpu.memory_space<vmem>>, vector<1x1xf32>,
    } else {
    }
    return
  }
  func.func @transform_0(%arg0: i32, %arg1: i32) -> (i32, i32) {
    %c0_i32 = arith.constant 0 : i32
    %c0_i32_0 = arith.constant 0 : i32
    return %arg0, %c0_i32 : i32, i32
  }
  func.func @transform_1(%arg0: i32, %arg1: i32) -> (i32, i32) {
    %c0_i32 = arith.constant 0 : i32
    %c0_i32_0 = arith.constant 0 : i32
    return %arg1, %c0_i32 : i32, i32
  }
  func.func @transform_2(%arg0: i32, %arg1: i32) -> (i32, i32) {
    %c0_i32 = arith.constant 0 : i32
    %c0_i32_0 = arith.constant 0 : i32
    %c0_i32_1 = arith.constant 0 : i32
    return %c0_i32, %c0_i32_0 : i32, i32
  }
}

</mosaic_0001>

<bundles_post_ra>
// kernel: tpu_custom_call.1
= control target key start
LH: loop header
LB: loop body
LE: loop exit
PB: predicated region body
PF: predicated region fallthrough
CT: control target
= control target key end

     0   :  { %7 = vsyncpa [#allocation6], 0  ;;  %s430_s0 = inlined_call_operand.hbm [shape: f32[8,32], index: 0, kind: input, shape index: {}]   ;;  %s431_s1 = inlined_call_operand.hbm [shape: f32[8,32], index: 1, kind: input, shape index: {}]   ;;  %s432_s2 = inlined_call_operand.hbm [shape: f32[1,1], index: 2, kind: output, shape index: {}]  }
   0x1   :  { %8 = vsyncpa [#allocation9], 0 }
   0x2   :  { %9 = vsyncpa [#allocation7], 0  ;;  %s358_s9 = smov [#allocation5]   ;;  %s359_s11 = smov [#allocation8]  }
   0x3   :  { %s16_s10 = sshll.u32 %s358_s9, 4  ;;  %s26_s12 = sshll.u32 %s359_s11, 4  ;;  %s17_s10 = int_to_ptr.vmem [resolvable:$true] %s16_s10  ;;  %s27_s12 = int_to_ptr.vmem [resolvable:$true] %s26_s12 }
   0x4   :  { %s286_s15 = scalar_lea.hbm %s430_s0, 128 }
   0x5   :  { %p287_p0 = scmp.ne.s32.totalorder %s430_s0, %s286_s15  ;;  %p290_p1 = scmp.lt.u32.totalorder %s286_s15, %s430_s0 }
   0x7   :  { %p292_p2 = pnand %p290_p1, %p287_p0 }
   0x9   :  { %295 = shalt.err (!%p292_p2)
}
   0xa   :  { %s296_s20 = scalar_lea.vmem %s17_s10, 128  ;;  %p301_p4 = scmp.lt.s32.totalorder %s17_s10, %s17_s10 }
   0xb   :  { %p297_p3 = scmp.ne.s32.totalorder %s17_s10, %s296_s20  ;;  %p302_p5 = scmp.lt.s32.totalorder %s296_s20, %s296_s20 }
   0xd   :  { %p303_p6 = por %p302_p5, %p301_p4 }
   0xf   :  { %p304_p7 = pnand %p303_p6, %p297_p3 }
  0x11   :  { %307 = shalt.err (!%p304_p7)
}
  0x12   :  { %19 = dma.hbm_to_vmem [thread:$0]  %s430_s0, 128, %s17_s10, [#allocation6]  }
  0x13   :  { %s308_s25 = scalar_lea.hbm %s431_s1, 128 }
  0x14   :  { %p309_p8 = scmp.ne.s32.totalorder %s431_s1, %s308_s25  ;;  %p312_p9 = scmp.lt.u32.totalorder %s308_s25, %s431_s1 }
  0x16   :  { %p314_p10 = pnand %p312_p9, %p309_p8 }
  0x18   :  { %317 = shalt.err (!%p314_p10)
}
  0x19   :  { %s318_s30 = scalar_lea.vmem %s27_s12, 128  ;;  %p323_p12 = scmp.lt.s32.totalorder %s27_s12, %s27_s12 }
  0x1a   :  { %p319_p11 = scmp.ne.s32.totalorder %s27_s12, %s318_s30  ;;  %p324_p13 = scmp.lt.s32.totalorder %s318_s30, %s318_s30 }
  0x1c   :  { %p325_p0 = por %p324_p13, %p323_p12 }
  0x1e   :  { %p326_p1 = pnand %p325_p0, %p319_p11 }
  0x20   :  { %329 = shalt.err (!%p326_p1)
}
  0x21   :  { %29 = dma.hbm_to_vmem [thread:$0]  %s431_s1, 128, %s27_s12, [#allocation9]  }
  0x22   :  { %352 = dma.done.wait [#allocation6], 128  }
  0x23   :  { %353 = vsyncadd [#allocation6], 4294967168 }
  0x24   :  { %354 = dma.done.wait [#allocation9], 128  }
  0x25   :  { %355 = vsyncadd [#allocation9], 4294967168  ;;  %v52_v0 = vld [vmem:[#allocation8] sm:$0xff]  ;;  %vm54_vm0 = vcmask 261120   ;;  %v51_v1 = vld [vmem:[#allocation5] sm:$0xff]  ;;  %v360_v6 = vmov 0.0  }
  0x26   :  { %v60_v2 = vmul.f32 %v52_v0, %v52_v0  ;;  %v53_v3 = vmul.f32 %v51_v1, %v51_v1  ;;  %260 = vmatprep.subr.mxu0 %v360_v6  ;;  %vm361_vm1 = vmmov 0   ;;  %vm44_vm2 = vcmask 57344   ;;  %s362_s7 = smov [#allocation10]  }
  0x27   :  { %262 = vmatprep.mubr.msk.f32.mxu0 %vm361_vm1, %v360_v6  ;;  %45 = vst.msk [vmem:[#allocation4] sm:$0x1] %vm44_vm2, %v360_v6  ;;  %vm49_vm3 = vcmask 7168   ;;  %vm149_vm4 = vcmask 64512   ;;  %vm42_vm5 = vcmask 0   ;;  %s245_s8 = sshll.u32 %s362_s7, 4  ;;  %s246_s8 = int_to_ptr.vmem [resolvable:$true] %s245_s8 }
  0x28   :  { %v61_v4 = vsel %vm54_vm0, %v60_v2, 0.0  ;;  %v55_v5 = vsel %vm54_vm0, %v53_v3, 0.0  ;;  %50 = vst.msk [vmem:[#allocation3] sm:$0xff] %vm49_vm3, %v360_v6  ;;  %s330_s9 = scalar_lea.vmem %s246_s8, 16  ;;  %s334_s10 = scalar_lea.vmem %s246_s8, 32 }
  0x29   :  { %62 = vadd.xlane.f32.xlu0 %v61_v4  ;;  %43 = vst.msk [vmem:[#allocation2] sm:$0x1] %vm42_vm5, %v360_v6  ;;  %p331_p2 = scmp.ne.s32.totalorder %s246_s8, %s330_s9  ;;  %p335_p3 = scmp.lt.s32.totalorder %s246_s8, %s246_s8 }
  0x2a   :  { %p336_p4 = scmp.lt.s32.totalorder %s334_s10, %s330_s9 }
  0x2c   :  { %p337_p5 = por %p336_p4, %p335_p3 }
  0x2d   :  { %56 = vadd.xlane.f32.xlu0 %v55_v5 }
  0x2e   :  { %v156_v29 = vld [vmem:[#allocation4] sm:$0x1]  ;;  %p338_p6 = pnand %p337_p5, %p331_p2 }
  0x2f   :  { %v148_v37 = vld [vmem:[#allocation3] sm:$0xff] }
  0x30   :  { %v170_v52 = vld [vmem:[#allocation2] sm:$0x1] }
  0xb6   :  { %v63_v7 = vpop.xlane.xlu0 %62 }
  0xb7   :  { %v64_v8 = vmax.f32 %v63_v7, 1e-16 }
  0xb9   :  { %276 = vrsqrt.f32 %v64_v8 }
  0xba   :  { %v57_v9 = vpop.xlane.xlu0 %56 }
  0xbb   :  { %v58_v10 = vmax.f32 %v57_v9, 1e-16 }
  0xbd   :  { %278 = vrsqrt.f32 %v58_v10 }
  0xc3   :  { %v277_v11 = vpop.eup %276 }
  0xc4   :  { %v68_v12 = vmul.f32 %v277_v11, %v52_v0 }
  0xc6   :  { %261 = vmatpush3.xpose.msk.msra.mxu0 %vm54_vm0, %v68_v12 }
  0xc7   :  { %v279_v13 = vpop.eup %278 }
  0xc8   :  { %v66_v14 = vmul.f32 20.0, %v279_v13 }
  0xca   :  { %v67_v15 = vmul.f32 %v66_v14, %v51_v1 }
  0xcc   :  { %263 = vmatmul.mubr.msk.f32.vlgmr.msra.gmra.mrb[0].mxu0 %vm54_vm0, %v67_v15  ;;  %v171_v16 = vmul.f32 %v68_v12, %v67_v15 }
  0xce   :  { %v172_v25 = vsel %vm54_vm0, %v171_v16, 0.0 }
 0x19f   :  { %v141_v17 = vpop.f32.mrb[0].mxu0 }
 0x1a0   :  { %v257_v18 = vadd.f32 -20.0, %v141_v17  ;;  %v264_v19 = vpop.f32.mrb[1].mxu0 }
 0x1a2   :  { %v146_v20 = vmul.f32 1.442695, %v257_v18 }
 0x1a4   :  { %280 = vpow2.f32 %v146_v20 }
 0x1ae   :  { %v281_v21 = vpop.eup %280 }
 0x1af   :  { %v150_v22 = vsel %vm149_vm4, %v281_v21, 0.0 }
 0x1b0   :  { %151 = vadd.xlane.f32.xlu1 %v150_v22  ;;  %v157_v23 = vrot.slane %v150_v22, 4 }
 0x1b2   :  { %v158_v24 = vadd.f32 %v157_v23, %v150_v22 }
 0x1b4   :  { %v159_v26 = vrot.slane %v158_v24, 2  ;;  %173 = vadd.xlane.f32.xlu1 %v172_v25 }
 0x1b6   :  { %v160_v27 = vadd.f32 %v159_v26, %v158_v24 }
 0x1b8   :  { %v161_v28 = vrot.slane %v160_v27, 1 }
 0x1ba   :  { %v162_v30 = vadd.f32 %v161_v28, %v160_v27 }
 0x1bc   :  { %v163_v31 = vadd.f32 %v162_v30, %v156_v29 }
 0x1be   :  { %165 = vst.msk [vmem:[#allocation4] sm:$0x1] %vm44_vm2, %v163_v31 }
 0x1c5   :  { %v213_v32 = vld [vmem:[#allocation4] sm:$0x1] }
 0x1c6   :  { %282 = vlog2.f32 %v213_v32 }
 0x1d0   :  { %v283_v33 = vpop.eup %282 }
 0x1d1   :  { %v215_v34 = vmul.f32 0.6931472, %v283_v33 }
 0x1d3   :  { %v216_v35 = vadd.f32 20.0, %v215_v34 }
 0x1d5   :  { %v217_v36 = vsel %vm44_vm2, %v216_v35, 0.0 }
 0x1d6   :  { %218 = vadd.xlane.f32.xlu1 %v217_v36 }
 0x23d   :  { %v152_v38 = vpop.xlane.xlu1 %151 }
 0x23e   :  { %v153_v39 = vadd.f32 %v152_v38, %v148_v37 }
 0x240   :  { %155 = vst.msk [vmem:[#allocation3] sm:$0xff] %vm49_vm3, %v153_v39 }
 0x241   :  { %v174_v40 = vpop.xlane.xlu1 %173 }
 0x242   :  { %v175_v41 = vrot.slane %v174_v40, 4 }
 0x244   :  { %v176_v42 = vadd.f32 %v175_v41, %v174_v40 }
 0x246   :  { %v177_v43 = vrot.slane %v176_v42, 2 }
 0x247   :  { %v191_v44 = vld [vmem:[#allocation3] sm:$0xff] }
 0x248   :  { %v178_v45 = vadd.f32 %v177_v43, %v176_v42  ;;  %284 = vlog2.f32 %v191_v44 }
 0x24a   :  { %v179_v46 = vrot.slane %v178_v45, 1 }
 0x24c   :  { %v180_v47 = vadd.f32 %v179_v46, %v178_v45 }
 0x24e   :  { %265 = vpush %v180_v47 }
 0x252   :  { %v285_v48 = vpop.eup %284 }
 0x253   :  { %v193_v49 = vmul.f32 0.6931472, %v285_v48 }
 0x255   :  { %v194_v50 = vadd.f32 20.0, %v193_v49 }
 0x257   :  { %v195_v51 = vsel %vm49_vm3, %v194_v50, 0.0 }
 0x258   :  { %196 = vadd.xlane.f32.xlu0 %v195_v51 }
 0x263   :  { %v219_v55 = vpop.xlane.xlu1 %218 }
 0x264   :  { %v220_v56 = vrot.slane %v219_v55, 4 }
 0x266   :  { %v221_v57 = vadd.f32 %v220_v56, %v219_v55 }
 0x268   :  { %v222_v58 = vrot.slane %v221_v57, 2 }
 0x26a   :  { %v223_v62 = vadd.f32 %v222_v58, %v221_v57 }
 0x26c   :  { %v224_v1 = vrot.slane %v223_v62, 1 }
 0x26e   :  { %v225_v4 = vadd.f32 %v224_v1, %v223_v62 }
 0x27f   :  { %s266_s1 = spop %265 }
 0x280   :  { %s182_s4 = smul.f32 2.0, %s266_s1 }
 0x282   :  { %v183_v53 = vstv %s182_s4 }
 0x283   :  { %v184_v54 = vadd.f32 %v183_v53, %v170_v52 }
 0x285   :  { %186 = vst.msk [vmem:[#allocation2] sm:$0x1] %vm42_vm5, %v184_v54 }
 0x28c   :  { %v190_v5 = vld [vmem:[#allocation2] sm:$0x1] }
 0x2e5   :  { %v197_v59 = vpop.xlane.xlu0 %196 }
 0x2e6   :  { %v198_v60 = vrot.slane %v197_v59, 4 }
 0x2e8   :  { %v199_v61 = vadd.f32 %v198_v60, %v197_v59 }
 0x2ea   :  { %v200_v63 = vrot.slane %v199_v61, 2 }
 0x2ec   :  { %v201_v0 = vadd.f32 %v200_v63, %v199_v61 }
 0x2ee   :  { %v202_v2 = vrot.slane %v201_v0, 1 }
 0x2f0   :  { %v203_v3 = vadd.f32 %v202_v2, %v201_v0 }
 0x2f2   :  { %267 = vpush %v203_v3 }
 0x2f3   :  { %269 = vpush %v225_v4 }
 0x323   :  { %s268_s5 = spop %267 }
 0x324   :  { %v205_v6 = vstv %s268_s5  ;;  %s270_s6 = spop %269 }
 0x325   :  { %v206_v7 = vsub.f32 %v190_v5, %v205_v6  ;;  %v227_v9 = vstv %s270_s6 }
 0x327   :  { %208 = vst.msk [vmem:[#allocation2] sm:$0x1] %vm42_vm5, %v206_v7 }
 0x32e   :  { %v212_v8 = vld [vmem:[#allocation2] sm:$0x1] }
 0x32f   :  { %v228_v10 = vsub.f32 %v212_v8, %v227_v9 }
 0x331   :  { %230 = vst.msk [vmem:[#allocation2] sm:$0x1] %vm42_vm5, %v228_v10 }
 0x338   :  { %v233_v11 = vld [vmem:[#allocation2] sm:$0x1] }
 0x339   :  { %v234_v12 = vsub.f32 0.0, %v233_v11 }
 0x33b   :  { %v236_v13 = vmul.f32 0.125, %v234_v12 }
 0x33d   :  { %238 = vst.msk [vmem:[#allocation10] sm:$0x1] %vm42_vm5, %v236_v13 }
 0x33e   :  { %341 = shalt.err (!%p338_p6)
}
 0x33f   :  { %s342_s13 = scalar_lea.hbm %s432_s2, 16 }
 0x340   :  { %p343_p7 = scmp.ne.s32.totalorder %s432_s2, %s342_s13  ;;  %p346_p8 = scmp.lt.u32.totalorder %s342_s13, %s432_s2 }
 0x342   :  { %p348_p9 = pnand %p346_p8, %p343_p7 }
 0x344   :  { %351 = shalt.err (!%p348_p9)
}
 0x345   :  { %248 = dma.vmem_to_hbm [thread:$0]  %s246_s8, 16, %s432_s2, [#allocation7]  }
 0x346   :  { %356 = dma.done.wait [#allocation7], 16  }
 0x347   :  { %357 = vsyncadd [#allocation7], 4294967280 }
 0x348   :  { %252 = vsyncpa [#allocation6], 1 }
 0x349   :  { %253 = vsyncpa [#allocation9], 1 }
 0x34a   :  { %254 = vsyncpa [#allocation7], 1 }

</bundles_post_ra>
